<compile_context>
chip_gen: v7x
topology: tpu7x:2x2x1
jax: 0.10.0
libtpu: 0.0.40
codegen_flags: <defaults>
</compile_context>

<pallas_src>
import jax
import jax.numpy as jnp
from jax.experimental import pallas as pl
from jax.experimental.pallas import tpu as pltpu

EPS = 1e-5


# ---------------------------------------------------------------------------
# in-kernel helpers
# ---------------------------------------------------------------------------
def _conv3x3_rows(act_hw, w_ref, pad_ref):
    """3x3 conv (stride 1, pad 1) on one sample in row layout.

    act_hw:  (H, W*Cin) f32 activation rows.
    w_ref:   (3, W*Cin, W*Cout) bf16 banded weights (dx taps + horizontal padding
             folded into the matrix).
    pad_ref: (H+2, W*Cin) f32 VMEM scratch used only for the +/-1 row halo.
    returns  (H, W*Cout) f32.
    """
    H = act_hw.shape[0]
    zrow = jnp.zeros((1, pad_ref.shape[1]), pad_ref.dtype)
    pad_ref[0:1, :] = zrow                       # zero ONLY the two halo rows
    pad_ref[H + 1:H + 2, :] = zrow
    pad_ref[1:H + 1, :] = act_hw
    acc = jnp.zeros((H, w_ref.shape[-1]), jnp.float32)
    for dy in range(3):                          # 3 well-shaped bf16 MXU matmuls
        rows = pad_ref[dy:dy + H, :].astype(jnp.bfloat16)
        acc = acc + jnp.dot(rows, w_ref[dy], preferred_element_type=jnp.float32)
    return acc


def _conv1_kernel(x_ref, w_ref, raw_ref, sum_ref, ssq_ref, pad_ref):
    raw = _conv3x3_rows(x_ref[0], w_ref, pad_ref)           # (H, W*C) f32
    raw_ref[0] = raw
    sum_ref[0] = jnp.sum(raw, axis=0, keepdims=True)        # partial BN1 stats
    ssq_ref[0] = jnp.sum(raw * raw, axis=0, keepdims=True)


def _bn1_relu_conv2_kernel(raw1_ref, scale_ref, shift_ref, w_ref,
                           raw_ref, sum_ref, ssq_ref, pad_ref):
    # single-pass BN affine (precomputed scale/shift) + ReLU, all in f32
    y1 = jnp.maximum(raw1_ref[0] * scale_ref[...] + shift_ref[...], 0.0)
    raw = _conv3x3_rows(y1, w_ref, pad_ref)
    raw_ref[0] = raw
    sum_ref[0] = jnp.sum(raw, axis=0, keepdims=True)        # partial BN2 stats
    ssq_ref[0] = jnp.sum(raw * raw, axis=0, keepdims=True)


def _bn2_add_relu_kernel(raw2_ref, x_ref, scale_ref, shift_ref, out_ref):
    out_ref[0] = jnp.maximum(
        raw2_ref[0] * scale_ref[...] + shift_ref[...] + x_ref[0], 0.0)


# ---------------------------------------------------------------------------
# wrapper-side glue (tiny, channel-sized work only)
# ---------------------------------------------------------------------------
def _banded_weights(w_hwio, w_cols):
    """(3, 3, Cin, Cout) -> (3, W*Cin, W*Cout).

    For each kernel row dy, the dx taps and the horizontal zero padding are
    folded into a banded matrix so the conv becomes a plain row matmul.
    """
    kh, kw, cin, cout = w_hwio.shape
    wi = jnp.arange(w_cols)[:, None]        # input column index
    wo = jnp.arange(w_cols)[None, :]        # output column index
    b = jnp.zeros((kh, w_cols, cin, w_cols, cout), jnp.float32)
    for dx in range(kw):
        m = (wi == wo + dx - 1).astype(jnp.float32)             # (W, W) band
        b = b + (m[None, :, None, :, None]
                 * w_hwio[:, dx].astype(jnp.float32)[:, None, :, None, :])
    return b.reshape(kh, w_cols * cin, w_cols * cout)


def _bn_scale_shift(sums, ssqs, gamma, beta, count, w_cols, c):
    """Per-sample (N,1,W*C) partial sums/sumsq -> per-channel affine, tiled to rows."""
    s = jnp.sum(sums.reshape(-1, w_cols, c), axis=(0, 1))
    q = jnp.sum(ssqs.reshape(-1, w_cols, c), axis=(0, 1))
    mean = s / count
    var = q / count - mean * mean                 # biased var (training-mode BN)
    scale = gamma.astype(jnp.float32) * jax.lax.rsqrt(var + EPS)
    shift = beta.astype(jnp.float32) - mean * scale
    return (jnp.tile(scale, w_cols).reshape(1, w_cols * c),
            jnp.tile(shift, w_cols).reshape(1, w_cols * c))


def basic_block_forward(x_nchw, w1_hwio, w2_hwio, g1, b1, g2, b2):
    """x_nchw: (N, C, H, W) like PyTorch; conv weights in HWIO (3, 3, Cin, Cout)."""
    x = jnp.transpose(x_nchw, (0, 2, 3, 1)).astype(jnp.float32)     # NHWC
    N, H, W, Cin = x.shape
    Cout = w1_hwio.shape[-1]
    assert Cin == Cout, "identity residual path requires inplanes == planes"
    WC = W * Cout                               # = 128 here -> lane-dense rows

    x_rows = x.reshape(N, H, W * Cin)
    w1b = _banded_weights(w1_hwio, W).astype(jnp.bfloat16)          # (3, W*C, W*C)
    w2b = _banded_weights(w2_hwio, W).astype(jnp.bfloat16)

    # One sample per grid step.  For larger spatial sizes also tile H (with a
    # +/-1 row halo) so each block stays well under v7x's 32 MiB scoped VMEM.
    grid = (N,)
    cparams = pltpu.CompilerParams(dimension_semantics=("parallel",))
    row_spec = pl.BlockSpec((1, H, WC), lambda n: (n, 0, 0))
    stat_spec = pl.BlockSpec((1, 1, WC), lambda n: (n, 0, 0))
    vec_spec = pl.BlockSpec((1, WC), lambda n: (0, 0))
    wmat_spec = pl.BlockSpec((3, W * Cin, WC), lambda n: (0, 0, 0))

    row_shape = jax.ShapeDtypeStruct((N, H, WC), jnp.float32)
    stat_shape = jax.ShapeDtypeStruct((N, 1, WC), jnp.float32)
    pad_scratch = pltpu.VMEM((H + 2, WC), jnp.float32)

    # --- kernel 1: conv1 + partial bn1 stats --------------------------------
    raw1, s1, q1 = pl.pallas_call(
        _conv1_kernel,
        grid=grid,
        in_specs=[row_spec, wmat_spec],
        out_specs=[row_spec, stat_spec, stat_spec],
        out_shape=[row_shape, stat_shape, stat_shape],
        scratch_shapes=[pad_scratch],
        compiler_params=cparams,
    )(x_rows, w1b)

    scale1, shift1 = _bn_scale_shift(s1, q1, g1, b1, N * H * W, W, Cout)

    # --- kernel 2: bn1 affine + relu + conv2 + partial bn2 stats -------------
    raw2, s2, q2 = pl.pallas_call(
        _bn1_relu_conv2_kernel,
        grid=grid,
        in_specs=[row_spec, vec_spec, vec_spec, wmat_spec],
        out_specs=[row_spec, stat_spec, stat_spec],
        out_shape=[row_shape, stat_shape, stat_shape],
        scratch_shapes=[pad_scratch],
        compiler_params=cparams,
    )(raw1, scale1, shift1, w2b)

    scale2, shift2 = _bn_scale_shift(s2, q2, g2, b2, N * H * W, W, Cout)

    # --- kernel 3: bn2 affine + residual add + relu --------------------------
    out_rows = pl.pallas_call(
        _bn2_add_relu_kernel,
        grid=grid,
        in_specs=[row_spec, row_spec, vec_spec, vec_spec],
        out_specs=row_spec,
        out_shape=row_shape,
        compiler_params=cparams,
    )(raw2, x_rows, scale2, shift2)

    out = out_rows.reshape(N, H, W, Cout)
    return jnp.transpose(out, (0, 3, 1, 2))                         # back to NCHW


# ---------------------------------------------------------------------------
# pure-JAX reference + self-test
# ---------------------------------------------------------------------------
def _reference(x_nchw, w1, w2, g1, b1, g2, b2):
    """Reference: conv inputs cast to bf16 (f32 accumulation) to mirror the
    kernel's MXU precision; training-mode BN with biased variance."""
    x = jnp.transpose(x_nchw, (0, 2, 3, 1)).astype(jnp.float32)

    def conv(y, w):
        return jax.lax.conv_general_dilated(
            y.astype(jnp.bfloat16), w.astype(jnp.bfloat16),
            window_strides=(1, 1), padding="SAME",
            dimension_numbers=("NHWC", "HWIO", "NHWC"),
            preferred_element_type=jnp.float32)

    def bn(y, g, b):
        m = jnp.mean(y, axis=(0, 1, 2), keepdims=True)
        v = jnp.mean((y - m) ** 2, axis=(0, 1, 2), keepdims=True)
        return (y - m) * jax.lax.rsqrt(v + EPS) * g + b

    o = jnp.maximum(bn(conv(x, w1), g1, b1), 0.0)
    o = bn(conv(o, w2), g2, b2)
    o = jnp.maximum(o + x, 0.0)
    return jnp.transpose(o, (0, 3, 1, 2))


if __name__ == "__main__":
    # inplanes = planes = 8 (required for the identity add when stride=1 and
    # downsample is None), batch=2, spatial 16x16  ->  W*C = 128 (lane-dense).
    N, C, H, W = 2, 8, 16, 16
    key = jax.random.PRNGKey(0)
    kx, k1, k2 = jax.random.split(key, 3)

    x = jax.random.normal(kx, (N, C, H, W), jnp.float32)
    w1 = jax.random.normal(k1, (3, 3, C, C), jnp.float32) * 0.2     # HWIO, bias=False
    w2 = jax.random.normal(k2, (3, 3, C, C), jnp.float32) * 0.2
    g1 = jnp.ones((C,), jnp.float32)                                # BN defaults
    b1 = jnp.zeros((C,), jnp.float32)
    g2 = jnp.ones((C,), jnp.float32)
    b2 = jnp.zeros((C,), jnp.float32)

    out = jax.block_until_ready(basic_block_forward(x, w1, w2, g1, b1, g2, b2))
    ref = jax.block_until_ready(_reference(x, w1, w2, g1, b1, g2, b2))

    assert out.shape == (N, C, H, W)
    # tolerance accounts for bf16 MXU inputs (f32 accumulation) on both sides
    assert jnp.allclose(out, ref, atol=2e-2, rtol=2e-2), "mismatch vs JAX reference"
    print("KERNEL_OK")
</pallas_src>

<mosaic_0001>
module attributes {stable_mosaic.version = 11 : i64} {
  func.func @_conv1_kernel(%arg0: i32, %arg1: memref<1x16x128xf32, #tpu.memory_space<vmem>>, %arg2: memref<3x128x128xbf16, #tpu.memory_space<vmem>>, %arg3: memref<1x16x128xf32, #tpu.memory_space<vmem>>, %arg4: memref<1x1x128xf32, #tpu.memory_space<vmem>>, %arg5: memref<1x1x128xf32, #tpu.memory_space<vmem>>, %arg6: memref<18x128xf32, #tpu.memory_space<vmem>>) attributes {dimension_semantics = [#tpu.dimension_semantics<parallel>], iteration_bounds = array<i64: 2>, scalar_prefetch = 0 : i64, scratch_operands = 1 : i64, tpu.core_type = #tpu.core_type<tc>, window_params = [{transform_indices = @transform_0, window_bounds = array<i64: 1, 16, 128>}, {pipeline_mode = #tpu.pipeline_mode<synchronous>, transform_indices = @transform_1, window_bounds = array<i64: 3, 128, 128>}, {transform_indices = @transform_2, window_bounds = array<i64: 1, 16, 128>}, {transform_indices = @transform_3, window_bounds = array<i64: 1, 1, 128>}, {transform_indices = @transform_4, window_bounds = array<i64: 1, 1, 128>}]} {
    %c0 = arith.constant 0 : index
    %c0_0 = arith.constant 0 : index
    %c0_1 = arith.constant 0 : index
    %0 = vector.load %arg1[%c0, %c0_0, %c0_1] : memref<1x16x128xf32, #tpu.memory_space<vmem>>, vector<1x16x128xf32>
    %1 = vector.shape_cast %0 : vector<1x16x128xf32> to vector<16x128xf32>
    %cst = arith.constant 0.000000e+00 : f32
    %2 = vector.broadcast %cst : f32 to vector<1x128xf32>
    %c0_2 = arith.constant 0 : index
    %c0_3 = arith.constant 0 : index
    %3 = vector.load %arg6[%c0_2, %c0_3] : memref<18x128xf32, #tpu.memory_space<vmem>>, vector<1x128xf32>
    tpu.vector_store %arg6[%c0_2, %c0_3], %2 {strides = array<i32>} : memref<18x128xf32, #tpu.memory_space<vmem>>, vector<1x128xf32>,
    %c17 = arith.constant 17 : index
    %c0_4 = arith.constant 0 : index
    %4 = vector.load %arg6[%c17, %c0_4] : memref<18x128xf32, #tpu.memory_space<vmem>>, vector<1x128xf32>
    tpu.vector_store %arg6[%c17, %c0_4], %2 {strides = array<i32>} : memref<18x128xf32, #tpu.memory_space<vmem>>, vector<1x128xf32>,
    %c1 = arith.constant 1 : index
    %c0_5 = arith.constant 0 : index
    %5 = vector.load %arg6[%c1, %c0_5] : memref<18x128xf32, #tpu.memory_space<vmem>>, vector<16x128xf32>
    tpu.vector_store %arg6[%c1, %c0_5], %1 {strides = array<i32>} : memref<18x128xf32, #tpu.memory_space<vmem>>, vector<16x128xf32>,
    %cst_6 = arith.constant 0.000000e+00 : f32
    %6 = vector.broadcast %cst_6 : f32 to vector<16x128xf32>
    %c0_7 = arith.constant 0 : index
    %c0_8 = arith.constant 0 : index
    %7 = vector.load %arg6[%c0_7, %c0_8] : memref<18x128xf32, #tpu.memory_space<vmem>>, vector<16x128xf32>
    %8 = arith.truncf %7 : vector<16x128xf32> to vector<16x128xbf16>
    %c0_9 = arith.constant 0 : index
    %c0_10 = arith.constant 0 : index
    %c0_11 = arith.constant 0 : index
    %9 = vector.load %arg2[%c0_9, %c0_10, %c0_11] : memref<3x128x128xbf16, #tpu.memory_space<vmem>>, vector<1x128x128xbf16>
    %10 = vector.shape_cast %9 : vector<1x128x128xbf16> to vector<128x128xbf16>
    %cst_12 = arith.constant dense<0.000000e+00> : vector<16x128xf32>
    %11 = tpu.matmul %8, %10, %cst_12 {dimension_numbers = #tpu.dot_dimension_numbers<[1], [0], [0], [1], [0, 0, 1, 1], [], []>} : vector<16x128xbf16>, vector<128x128xbf16>, vector<16x128xf32> -> vector<16x128xf32>
    %12 = arith.addf %6, %11 : vector<16x128xf32>
    %c1_13 = arith.constant 1 : index
    %c0_14 = arith.constant 0 : index
    %13 = vector.load %arg6[%c1_13, %c0_14] : memref<18x128xf32, #tpu.memory_space<vmem>>, vector<16x128xf32>
    %14 = arith.truncf %13 : vector<16x128xf32> to vector<16x128xbf16>
    %c1_15 = arith.constant 1 : index
    %c0_16 = arith.constant 0 : index
    %c0_17 = arith.constant 0 : index
    %15 = vector.load %arg2[%c1_15, %c0_16, %c0_17] : memref<3x128x128xbf16, #tpu.memory_space<vmem>>, vector<1x128x128xbf16>
    %16 = vector.shape_cast %15 : vector<1x128x128xbf16> to vector<128x128xbf16>
    %cst_18 = arith.constant dense<0.000000e+00> : vector<16x128xf32>
    %17 = tpu.matmul %14, %16, %cst_18 {dimension_numbers = #tpu.dot_dimension_numbers<[1], [0], [0], [1], [0, 0, 1, 1], [], []>} : vector<16x128xbf16>, vector<128x128xbf16>, vector<16x128xf32> -> vector<16x128xf32>
    %18 = arith.addf %12, %17 : vector<16x128xf32>
    %c2 = arith.constant 2 : index
    %c0_19 = arith.constant 0 : index
    %19 = vector.load %arg6[%c2, %c0_19] : memref<18x128xf32, #tpu.memory_space<vmem>>, vector<16x128xf32>
    %20 = arith.truncf %19 : vector<16x128xf32> to vector<16x128xbf16>
    %c2_20 = arith.constant 2 : index
    %c0_21 = arith.constant 0 : index
    %c0_22 = arith.constant 0 : index
    %21 = vector.load %arg2[%c2_20, %c0_21, %c0_22] : memref<3x128x128xbf16, #tpu.memory_space<vmem>>, vector<1x128x128xbf16>
    %22 = vector.shape_cast %21 : vector<1x128x128xbf16> to vector<128x128xbf16>
    %cst_23 = arith.constant dense<0.000000e+00> : vector<16x128xf32>
    %23 = tpu.matmul %20, %22, %cst_23 {dimension_numbers = #tpu.dot_dimension_numbers<[1], [0], [0], [1], [0, 0, 1, 1], [], []>} : vector<16x128xbf16>, vector<128x128xbf16>, vector<16x128xf32> -> vector<16x128xf32>
    %24 = arith.addf %18, %23 : vector<16x128xf32>
    %c0_24 = arith.constant 0 : index
    %c0_25 = arith.constant 0 : index
    %c0_26 = arith.constant 0 : index
    %25 = vector.load %arg3[%c0_24, %c0_25, %c0_26] : memref<1x16x128xf32, #tpu.memory_space<vmem>>, vector<1x16x128xf32>
    %26 = vector.shape_cast %25 : vector<1x16x128xf32> to vector<16x128xf32>
    %27 = vector.shape_cast %24 : vector<16x128xf32> to vector<1x16x128xf32>
    tpu.vector_store %arg3[%c0_24, %c0_25, %c0_26], %27 {strides = array<i32>} : memref<1x16x128xf32, #tpu.memory_space<vmem>>, vector<1x16x128xf32>,
    %cst_27 = arith.constant dense<0.000000e+00> : vector<128xf32>
    %28 = vector.multi_reduction <add>, %24, %cst_27 [0] : vector<16x128xf32> to vector<128xf32>
    %29 = vector.shape_cast %28 : vector<128xf32> to vector<1x128xf32>
    %c0_28 = arith.constant 0 : index
    %c0_29 = arith.constant 0 : index
    %c0_30 = arith.constant 0 : index
    %30 = vector.load %arg4[%c0_28, %c0_29, %c0_30] : memref<1x1x128xf32, #tpu.memory_space<vmem>>, vector<1x1x128xf32>
    %31 = vector.shape_cast %30 : vector<1x1x128xf32> to vector<1x128xf32>
    %32 = vector.shape_cast %29 : vector<1x128xf32> to vector<1x1x128xf32>
    tpu.vector_store %arg4[%c0_28, %c0_29, %c0_30], %32 {strides = array<i32>} : memref<1x1x128xf32, #tpu.memory_space<vmem>>, vector<1x1x128xf32>,
    %33 = arith.mulf %24, %24 : vector<16x128xf32>
    %cst_31 = arith.constant dense<0.000000e+00> : vector<128xf32>
    %34 = vector.multi_reduction <add>, %33, %cst_31 [0] : vector<16x128xf32> to vector<128xf32>
    %35 = vector.shape_cast %34 : vector<128xf32> to vector<1x128xf32>
    %c0_32 = arith.constant 0 : index
    %c0_33 = arith.constant 0 : index
    %c0_34 = arith.constant 0 : index
    %36 = vector.load %arg5[%c0_32, %c0_33, %c0_34] : memref<1x1x128xf32, #tpu.memory_space<vmem>>, vector<1x1x128xf32>
    %37 = vector.shape_cast %36 : vector<1x1x128xf32> to vector<1x128xf32>
    %38 = vector.shape_cast %35 : vector<1x128xf32> to vector<1x1x128xf32>
    tpu.vector_store %arg5[%c0_32, %c0_33, %c0_34], %38 {strides = array<i32>} : memref<1x1x128xf32, #tpu.memory_space<vmem>>, vector<1x1x128xf32>,
    return
  }
  func.func @transform_0(%arg0: i32) -> (i32, i32, i32) {
    %c0_i32 = arith.constant 0 : i32
    %c0_i32_0 = arith.constant 0 : i32
    %c0_i32_1 = arith.constant 0 : i32
    return %arg0, %c0_i32, %c0_i32_0 : i32, i32, i32
  }
  func.func @transform_1(%arg0: i32) -> (i32, i32, i32) {
    %c0_i32 = arith.constant 0 : i32
    %c0_i32_0 = arith.constant 0 : i32
    %c0_i32_1 = arith.constant 0 : i32
    %c0_i32_2 = arith.constant 0 : i32
    return %c0_i32, %c0_i32_0, %c0_i32_1 : i32, i32, i32
  }
  func.func @transform_2(%arg0: i32) -> (i32, i32, i32) {
    %c0_i32 = arith.constant 0 : i32
    %c0_i32_0 = arith.constant 0 : i32
    %c0_i32_1 = arith.constant 0 : i32
    return %arg0, %c0_i32, %c0_i32_0 : i32, i32, i32
  }
  func.func @transform_3(%arg0: i32) -> (i32, i32, i32) {
    %c0_i32 = arith.constant 0 : i32
    %c0_i32_0 = arith.constant 0 : i32
    %c0_i32_1 = arith.constant 0 : i32
    return %arg0, %c0_i32, %c0_i32_0 : i32, i32, i32
  }
  func.func @transform_4(%arg0: i32) -> (i32, i32, i32) {
    %c0_i32 = arith.constant 0 : i32
    %c0_i32_0 = arith.constant 0 : i32
    %c0_i32_1 = arith.constant 0 : i32
    return %arg0, %c0_i32, %c0_i32_0 : i32, i32, i32
  }
}

</mosaic_0001>

<bundles_post_ra>
// kernel: tpu_custom_call.1
= control target key start
LH: loop header
LB: loop body
LE: loop exit
PB: predicated region body
PF: predicated region fallthrough
CT: control target
= control target key end

     0   :  { %10 = vsyncpa [#allocation4], 0  ;;  %s1559_s0 = inlined_call_operand.hbm [shape: f32[2,16,128], index: 0, kind: input, shape index: {}]   ;;  %s1560_s1 = inlined_call_operand.hbm [shape: bf16[3,128,128], index: 1, kind: input, shape index: {}]   ;;  %s1561_s2 = inlined_call_operand.hbm [shape: f32[2,16,128], index: 2, kind: output, shape index: {0}]   ;;  %s1562_s3 = inlined_call_operand.hbm [shape: f32[2,1,128], index: 3, kind: output, shape index: {1}]   ;;  %s1563_s4 = inlined_call_operand.hbm [shape: f32[2,1,128], index: 4, kind: output, shape index: {2}]  }
   0x1   :  { %12 = vsyncpa [#allocation4 + $0x1], 0 }
   0x2   :  { %13 = vsyncpa [#allocation7], 0 }
   0x3   :  { %14 = vsyncpa [#allocation5], 0 }
   0x4   :  { %16 = vsyncpa [#allocation5 + $0x1], 0 }
   0x5   :  { %17 = vsyncpa [#allocation10], 0 }
   0x6   :  { %19 = vsyncpa [#allocation10 + $0x1], 0  ;;  %s1250_s15 = smov 0   ;;  %s1252_s16 = smov 0  }
   0x7   :  { %s1254_s17 = smov 0   ;;  %s1256_s18 = smov 0  }
   0x8 LB: > { %s1271_s19 = sadd.s32 4294967295, %s1210_s18   ;;  %s786_s20 = sadd.s32 4294967294, %s1210_s18   ;;  %s1210_s18 = sphi %s1256_s18, %s1583_s18   ;;  %s1206_s17 = sphi %s1254_s17, %s1582_s17   ;;  %s1202_s16 = sphi %s1252_s16, %s1581_s16   ;;  %s1198_s15 = sphi %s1250_s15, %s1580_s15  }
   0x9   : > { %p45_p0 = scmp.ne.s32.totalorder %s1202_s16, %s1198_s15  ;;  %p1564_p1 = scmp.eq.s32.totalorder %s1271_s19, 0 }
   0xa   : > { %p96_p3 = scmp.eq.s32.totalorder %s786_s20, 1  ;;  %p787_p5 = scmp.ge.s32.totalorder %s1210_s18, 1 }
   0xb   : > { %p1282_p4 = por %p1564_p1, %p45_p0  ;;  %p155_p7 = scmp.lt.s32.totalorder %s1210_s18, 3 }
   0xc   : > { %p1287_p6 = por %p96_p3, %p45_p0  ;;  %s1212_s24 = smov [#allocation6]  }
   0xd   : > { %s1567_s21 = scalar_select %p1282_p4, 1, 0 }
   0xe   : > { %s1568_s22 = scalar_select %p1287_p6, 1, 0 }
   0xf   : > { %p1292_p8 = pnand %p787_p5, %p155_p7  ;;  %s167_s25 = sshll.u32 %s1212_s24, 4  ;;  %s1296_s25 = int_to_ptr.vmem [resolvable:$true] %s167_s25 }
  0x10   : > { %s1308_s27 = sadd.s32 1, %s1210_s18   ;;  %s32_s28 = sadd.s32 1, %s1206_s17 }
  0x11   : > { %s1569_s23 = scalar_select %p1292_p8, 1, 0 }
  0x12   : > { %p935_p9 = pneg %p1292_p8  ;;  %s29_s29 = ssub.s32 %s1210_s18, %s1308_s27 }
  0x13   : > { %s1022_s6 = scalar_lea.hbm %s1560_s1, 3072 }
  0x14   : > { %p1303_p11 = pnand %p935_p9, %p1564_p1  ;;  %p1023_p12 = scmp.ne.s32.totalorder %s1560_s1, %s1022_s6 }
  0x15   : > { %p1029_p5 = scmp.lt.u32.totalorder %s1022_s6, %s1560_s1 }
  0x16   : > { %p1024_p13 = pneg %p1303_p11 }
  0x18   : > { %p1025_p0 = pnand %p1024_p13, %p1023_p12 }
  0x1a   : > { %p1026_p3 = pneg %p1025_p0 }
  0x1c   : > { %p1031_p7 = pnand %p1029_p5, %p1026_p3 }
  0x1e   : > { %1034 = shalt.err (!%p1031_p7)
}
  0x1f   : > { %s1035_s11 = scalar_lea.vmem %s1296_s25, 3072  ;;  %p1043_p2 = scmp.lt.s32.totalorder %s1296_s25, %s1296_s25 }
  0x20   : > { %p1036_p9 = scmp.ne.s32.totalorder %s1296_s25, %s1035_s11  ;;  %p1044_p6 = scmp.lt.s32.totalorder %s1035_s11, %s1035_s11 }
  0x22   : > { %p1038_p10 = pnand %p1036_p9, %p1024_p13  ;;  %p1045_p4 = por %p1044_p6, %p1043_p2 }
  0x24   : > { %p1039_p1 = pneg %p1038_p10 }
  0x26   : > { %p1046_p8 = pnand %p1045_p4, %p1039_p1 }
  0x28   : > { %1049 = shalt.err (!%p1046_p8)
}
  0x29   : > { %s1213_s12 = smov 64   ;;  %s1214_s13 = smov 4  }
  0x2a   : > { %938 = dma.hbm_to_vmem [thread:$0]  (!%p1303_p11), %s1560_s1, 3072, %s1296_s25, [#allocation7], %s1213_s12, %s1213_s12, %s1214_s13  }
  0x2b   : > { %p30_p2 = scmp.eq.s32.totalorder %s29_s29, 0  ;;  %p39_p1 = scmp.ne.s32.totalorder %s1206_s17, %s1202_s16 }
  0x2c   : > { %p40_p4 = scmp.eq.s32.totalorder %s1210_s18, 0  ;;  %p954_p6 = scmp.lt.s32.totalorder %s1210_s18, 2 }
  0x2d   : > { %s1339_s30 = scalar_select %p30_p2, %s1206_s17, %s32_s28  }
  0x2e   : > { %p41_p8 = por %p40_p4, %p39_p1  ;;  %p1571_p10 = scmp.eq.s32.totalorder %s1271_s19, 1 }
  0x2f   : > { %s181_s6 = sand.u32 1, %s1206_s17   ;;  %s828_s7 = sshll.u32 %s1210_s18, 8 }
  0x30   : > { %p1343_p12 = por %p1571_p10, %p39_p1  ;;  %s790_s8 = sshll.u32 %s181_s6, 4 }
  0x31   : > { %s1352_s10 = scalar_lea.hbm %s1559_s0, %s828_s7  ;;  %s185_s25 = scalar_lea.vmem [#allocation3], %s790_s8 }
  0x32   : > { %s192_s28 = sshll.u32 %s185_s25, 4  ;;  %p1354_p11 = pnand %p954_p6, %p41_p8  ;;  %s1358_s28 = int_to_ptr.vmem [resolvable:$true] %s192_s28 }
  0x33   : > { %s1360_s11 = scalar_lea.sflag [#allocation4], %s181_s6  ;;  %s1050_s12 = scalar_lea.hbm %s1352_s10, 256 }
  0x34   : > { %p1051_p13 = scmp.ne.s32.totalorder %s1352_s10, %s1050_s12  ;;  %p1052_p0 = pneg %p1354_p11 }
  0x35   : > { %s1055_s24 = scalar_lea.hbm %s1559_s0, 512  ;;  %p1056_p7 = scmp.lt.u32.totalorder %s1352_s10, %s1559_s0 }
  0x36   : > { %p1053_p3 = pnand %p1052_p0, %p1051_p13  ;;  %p1057_p9 = scmp.lt.u32.totalorder %s1055_s24, %s1050_s12 }
  0x37   : > { %p1059_p1 = scmp.lt.u32.totalorder %s1050_s12, %s1352_s10 }
  0x38   : > { %p1054_p5 = pneg %p1053_p3  ;;  %p1058_p2 = por %p1057_p9, %p1056_p7 }
  0x3a   : > { %p1060_p4 = por %p1059_p1, %p1058_p2 }
  0x3c   : > { %p1061_p6 = pnand %p1060_p4, %p1054_p5 }
  0x3e   : > { %1064 = shalt.err (!%p1061_p6)
}
  0x3f   : > { %s1065_s6 = scalar_lea.vmem %s1358_s28, 256  ;;  %s1215_s26 = smov [#allocation3]  }
  0x40   : > { %p1066_p8 = scmp.ne.s32.totalorder %s1358_s28, %s1065_s6  ;;  %s1070_s9 = sshll.u32 %s1215_s26, 4  ;;  %s1071_s9 = int_to_ptr.vmem [resolvable:$false] %s1070_s9 }
  0x41   : > { %s1072_s25 = scalar_lea.vmem %s1071_s9, 512  ;;  %p1073_p3 = scmp.lt.s32.totalorder %s1358_s28, %s1071_s9 }
  0x42   : > { %p1068_p10 = pnand %p1066_p8, %p1052_p0  ;;  %p1074_p7 = scmp.lt.s32.totalorder %s1072_s25, %s1065_s6 }
  0x44   : > { %p1069_p13 = pneg %p1068_p10  ;;  %p1075_p9 = por %p1074_p7, %p1073_p3 }
  0x46   : > { %p1076_p2 = pnand %p1075_p9, %p1069_p13 }
  0x48   : > { %1079 = shalt.err (!%p1076_p2)
}
  0x49   : > { %s1216_s12 = smov 128   ;;  %s1217_s13 = smov 8  }
  0x4a   : > { %942 = dma.hbm_to_vmem [thread:$0]  (!%p1354_p11), %s1352_s10, 256, %s1358_s28, %s1360_s11, %s1216_s12, %s1216_s12, %s1217_s13  }
  0x4b   : > { %p1574_p0 = scmp.ne.s32.totalorder %s1569_s23, 0 }
  0x4c   : > { %s1391_s14 = sand.u32 (!%p1574_p0), 1, %s1202_s16   ;;  %p1575_p5 = scmp.ne.s32.totalorder (!%p1574_p0), %s1567_s21, 0 }
  0x4d   : > { %204 = sbr.rel (%p1574_p0) target bundleno = 434 (0x1b2), region = 28  ;;  %s794_s24 = sshll.u32 (!%p1574_p0), %s1391_s14, 4 }
  0x4e   : > { %s207_s7 = scalar_lea.sflag (!%p1574_p0), [#allocation4], %s1391_s14  ;;  %s210_s8 = scalar_lea.vmem (!%p1574_p0), [#allocation3], %s794_s24 }
  0x54   : > { %1181 = dma.done.wait (%p1575_p5), %s207_s7, 256  }
  0x55   : > { %1183 = vsyncadd (%p1575_p5), %s207_s7, 4294967040  ;;  %p1576_p11 = scmp.eq.s32.totalorder %s1271_s19, 0 }
  0x57   : > { %1185 = dma.done.wait (%p1576_p11), [#allocation7], 3072   ;;  %p1577_p1 = pmov %p1576_p11 }
  0x58   : > { %v1218_v0 = vmov 0.0   ;;  %vm1219_vm0 = vmmov 0   ;;  %v998_v1 = vld [vmem:[#allocation6] sm:$0xff]   ;;  %v999_v2 = vld [vmem:[#allocation6 + $0x8] sm:$0xff]   ;;  %v1000_v3 = vld [vmem:[#allocation6 + $0x10] sm:$0xff]   ;;  %s234_s21 = scalar_lea.vmem [#allocation8], %s794_s24 }
  0x59   : > { %1187 = vsyncadd (%p1577_p1), [#allocation7], 4294964224  ;;  %877 = vmatprep.subr.bf16.mxu0 %v1218_v0  ;;  %250 = vst [vmem:[#allocation2] sm:$0x1] %v1218_v0  ;;  %857 = vmatprep.subr.bf16.mxu1 %v1218_v0  ;;  %v1006_v4 = vld [vmem:[#allocation6 + $0x40] sm:$0xff]   ;;  %v249_v6 = vld [vmem:[%s210_s8 + $0x8] sm:$0xff] }
  0x5a   : > { %251 = vst [vmem:[#allocation2 + $0x11] sm:$0x1] %v1218_v0  ;;  %893 = vmatprep.mubr.msk.bf16.mxu0 %vm1219_vm0, %v1218_v0  ;;  %873 = vmatprep.mubr.msk.bf16.mxu1 %vm1219_vm0, %v1218_v0  ;;  %v248_v5 = vld [vmem:[%s210_s8] sm:$0xff]  ;;  %v1001_v7 = vld [vmem:[#allocation6 + $0x18] sm:$0xff]   ;;  %253 = vst [vmem:[#allocation2 + $0x9] sm:$0xff] %v249_v6  ;;  %s624_s23 = sshll.u32 %s234_s21, 4  ;;  %s1440_s23 = int_to_ptr.vmem [resolvable:$true] %s624_s23 }
  0x5b   : > { %878 = vmatpush3.bf16.msra.mxu0 %v998_v1  ;;  %858 = vmatpush3.bf16.msra.mxu1 %v1006_v4  ;;  %252 = vst [vmem:[#allocation2 + $0x1] sm:$0xff] %v248_v5  ;;  %v1008_v8 = vld [vmem:[#allocation6 + $0x48] sm:$0xff]   ;;  %v1002_v9 = vld [vmem:[#allocation6 + $0x20] sm:$0xff]   ;;  %v1010_v10 = vld [vmem:[#allocation6 + $0x50] sm:$0xff]   ;;  %v275_v24 = vpack.c.bf16 %v249_v6, %v248_v5  ;;  %s829_s10 = sshll.u32 %s1271_s19, 8  ;;  %s603_s6 = scalar_lea.sflag [#allocation5], %s1391_s14 }
  0x5c   : > { %879 = vmatprep.subr.bf16.mxu0 %v1218_v0  ;;  %859 = vmatprep.subr.bf16.mxu1 %v1218_v0  ;;  %v1003_v11 = vld [vmem:[#allocation6 + $0x28] sm:$0xff]   ;;  %v1012_v12 = vld [vmem:[#allocation6 + $0x58] sm:$0xff]   ;;  %v1004_v13 = vld [vmem:[#allocation6 + $0x30] sm:$0xff]   ;;  %s1445_s11 = scalar_lea.hbm %s1561_s2, %s829_s10  ;;  %s1080_s26 = scalar_lea.vmem %s1440_s23, 256 }
  0x5d   : > { %v1014_v14 = vld [vmem:[#allocation6 + $0x60] sm:$0xff]   ;;  %v1005_v15 = vld [vmem:[#allocation6 + $0x38] sm:$0xff]   ;;  %v1016_v18 = vld [vmem:[#allocation6 + $0x68] sm:$0xff]   ;;  %p1081_p4 = scmp.ne.s32.totalorder %s1440_s23, %s1080_s26  ;;  %s1220_s9 = smov [#allocation8]  }
  0x5e   : > { %v1007_v20 = vld [vmem:[#allocation6 + $0x80] sm:$0xff]   ;;  %v1018_v21 = vld [vmem:[#allocation6 + $0x70] sm:$0xff]   ;;  %v1009_v22 = vld [vmem:[#allocation6 + $0x88] sm:$0xff]   ;;  %s1084_s25 = sshll.u32 %s1220_s9, 4  ;;  %s1085_s25 = int_to_ptr.vmem [resolvable:$false] %s1084_s25 }
  0x5f   : > { %880 = vmatpush3.bf16.msra.mxu0 %v999_v2  ;;  %860 = vmatpush3.bf16.msra.mxu1 %v1008_v8  ;;  %v1020_v23 = vld [vmem:[#allocation6 + $0x78] sm:$0xff]   ;;  %v1011_v25 = vld [vmem:[#allocation6 + $0x90] sm:$0xff]   ;;  %v1015_v27 = vld [vmem:[#allocation6 + $0xa0] sm:$0xff]   ;;  %p1082_p6 = pnand %p1081_p4, %p1343_p12  ;;  %s1086_s12 = scalar_lea.vmem %s1085_s25, 512 }
  0x60   : > { %881 = vmatprep.subr.bf16.mxu0 %v1218_v0  ;;  %861 = vmatprep.subr.bf16.mxu1 %v1218_v0  ;;  %v1013_v26 = vld [vmem:[#allocation6 + $0x98] sm:$0xff]   ;;  %v1017_v28 = vld [vmem:[#allocation6 + $0xa8] sm:$0xff]   ;;  %v1019_v29 = vld [vmem:[#allocation6 + $0xb0] sm:$0xff]   ;;  %p1087_p10 = scmp.lt.s32.totalorder %s1440_s23, %s1085_s25  ;;  %p1088_p13 = scmp.lt.s32.totalorder %s1086_s12, %s1080_s26 }
  0x61   : > { %v1021_v30 = vld [vmem:[#allocation6 + $0xb8] sm:$0xff]   ;;  %p1083_p8 = pneg %p1082_p6 }
  0x62   : > { %v254_v16 = vld [vmem:[#allocation2] sm:$0xff]  ;;  %v255_v17 = vld [vmem:[#allocation2 + $0x8] sm:$0xff]  ;;  %p1089_p3 = por %p1088_p13, %p1087_p10 }
  0x63   : > { %882 = vmatpush3.bf16.msra.mxu0 %v1000_v3  ;;  %862 = vmatpush3.bf16.msra.mxu1 %v1010_v10  ;;  %v256_v19 = vpack.c.bf16 %v255_v17, %v254_v16  ;;  %v471_v31 = vld [vmem:[#allocation2 + $0x2] sm:$0xff]  ;;  %v472_v32 = vld [vmem:[#allocation2 + $0xa] sm:$0xff] }
  0x64   : > { %883 = vmatprep.subr.bf16.mxu0 %v1218_v0  ;;  %863 = vmatprep.subr.bf16.mxu1 %v1218_v0  ;;  %v473_v33 = vpack.c.bf16 %v472_v32, %v471_v31  ;;  %p1090_p7 = pnand %p1089_p3, %p1083_p8 }
  0x67   : > { %884 = vmatpush3.bf16.msra.mxu0 %v1001_v7  ;;  %864 = vmatpush3.bf16.msra.mxu1 %v1012_v12 }
  0x68   : > { %885 = vmatprep.subr.bf16.mxu0 %v1218_v0  ;;  %865 = vmatprep.subr.bf16.mxu1 %v1218_v0 }
  0x6b   : > { %886 = vmatpush3.bf16.msra.mxu0 %v1002_v9  ;;  %866 = vmatpush3.bf16.msra.mxu1 %v1014_v14 }
  0x6c   : > { %887 = vmatprep.subr.bf16.mxu0 %v1218_v0  ;;  %867 = vmatprep.subr.bf16.mxu1 %v1218_v0 }
  0x6f   : > { %888 = vmatpush3.bf16.msra.mxu0 %v1003_v11  ;;  %868 = vmatpush3.bf16.msra.mxu1 %v1016_v18 }
  0x70   : > { %889 = vmatprep.subr.bf16.mxu0 %v1218_v0  ;;  %869 = vmatprep.subr.bf16.mxu1 %v1218_v0 }
  0x73   : > { %890 = vmatpush3.bf16.msra.mxu0 %v1004_v13  ;;  %870 = vmatpush3.bf16.msra.mxu1 %v1018_v21 }
  0x74   : > { %891 = vmatprep.subr.bf16.mxu0 %v1218_v0  ;;  %871 = vmatprep.subr.bf16.mxu1 %v1218_v0 }
  0x77   : > { %892 = vmatpush3.bf16.msra.mxu0 %v1005_v15  ;;  %872 = vmatpush3.bf16.msra.mxu1 %v1020_v23 }
  0x78   : > { %897 = vmatprep.subr.bf16.mxu0 %v1218_v0 }
  0x7a   : > { %894 = vmatmul.mubr.bf16.vlgmr.msra.gmra.mrb[0].mxu0 %v256_v19  ;;  %874 = vmatmul.mubr.bf16.vlgmr.msra.gmra.mrb[0].mxu1 %v275_v24 }
  0x7b   : > { %898 = vmatpush3.bf16.msra.mxu0 %v1007_v20  ;;  %913 = vmatprep.mubr.msk.bf16.mxu0 %vm1219_vm0, %v1218_v0 }
  0x7c   : > { %899 = vmatprep.subr.bf16.mxu0 %v1218_v0 }
  0x7f   : > { %900 = vmatpush3.bf16.msra.mxu0 %v1009_v22 }
  0x80   : > { %901 = vmatprep.subr.bf16.mxu0 %v1218_v0 }
  0x83   : > { %902 = vmatpush3.bf16.msra.mxu0 %v1011_v25 }
  0x84   : > { %903 = vmatprep.subr.bf16.mxu0 %v1218_v0 }
  0x87   : > { %904 = vmatpush3.bf16.msra.mxu0 %v1013_v26 }
  0x88   : > { %905 = vmatprep.subr.bf16.mxu0 %v1218_v0 }
  0x8b   : > { %906 = vmatpush3.bf16.msra.mxu0 %v1015_v27 }
  0x8c   : > { %907 = vmatprep.subr.bf16.mxu0 %v1218_v0 }
  0x8f   : > { %908 = vmatpush3.bf16.msra.mxu0 %v1017_v28 }
  0x90   : > { %909 = vmatprep.subr.bf16.mxu0 %v1218_v0 }
  0x93   : > { %910 = vmatpush3.bf16.msra.mxu0 %v1019_v29 }
  0x94   : > { %911 = vmatprep.subr.bf16.mxu0 %v1218_v0 }
  0x97   : > { %912 = vmatpush3.bf16.msra.mxu0 %v1021_v30 }
  0x9a   : > { %914 = vmatmul.mubr.bf16.vlgmr.msra.gmra.mrb[0].mxu0 %v473_v33 }
 0x14d   : > { %v375_v34 = vpop.f32.mrb[0].mxu1 }
 0x14e   : > { %v875_v35 = vpop.f32.mrb[1].mxu1 }
 0x14f   : > { %v378_v36 = vpop.f32.mrb[2].mxu1 }
 0x150   : > { %v876_v37 = vpop.f32.mrb[3].mxu1 }
 0x16d   : > { %v573_v38 = vpop.f32.mrb[0].mxu0 }
 0x16e   : > { %v917_v39 = vadd.f32 %v573_v38, %v375_v34  ;;  %v915_v40 = vpop.f32.mrb[1].mxu0 }
 0x16f   : > { %v576_v41 = vpop.f32.mrb[2].mxu0 }
 0x170   : > { %582 = vst [vmem:[%s234_s21] sm:$0xff] %v917_v39  ;;  %v918_v42 = vadd.f32 %v576_v41, %v378_v36  ;;  %v916_v43 = vpop.f32.mrb[3].mxu0  ;;  %v592_v44 = vmul.f32 %v917_v39, %v917_v39 }
 0x172   : > { %583 = vst [vmem:[%s234_s21 + $0x8] sm:$0xff] %v918_v42  ;;  %v584_v45 = vadd.f32 %v918_v42, %v917_v39  ;;  %v593_v46 = vmul.f32 %v918_v42, %v918_v42 }
 0x173   : > { %1093 = shalt.err (!%p1090_p7)
}
 0x174   : > { %s1094_s13 = scalar_lea.hbm %s1445_s11, 256  ;;  %s1098_s8 = scalar_lea.hbm %s1561_s2, 512 }
 0x175   : > { %p1095_p9 = scmp.ne.s32.totalorder %s1445_s11, %s1094_s13  ;;  %p1099_p5 = scmp.lt.u32.totalorder %s1445_s11, %s1561_s2 }
 0x176   : > { %p1100_p11 = scmp.lt.u32.totalorder %s1098_s8, %s1094_s13  ;;  %p1102_p4 = scmp.lt.u32.totalorder %s1094_s13, %s1445_s11 }
 0x177   : > { %p1096_p2 = pnand %p1095_p9, %p1343_p12 }
 0x178   : > { %p1101_p1 = por %p1100_p11, %p1099_p5 }
 0x179   : > { %p1097_p0 = pneg %p1096_p2 }
 0x17a   : > { %p1103_p6 = por %p1102_p4, %p1101_p1 }
 0x17c   : > { %p1104_p8 = pnand %p1103_p6, %p1097_p0 }
 0x17e   : > { %1107 = shalt.err (!%p1104_p8)
}
 0x17f   : > { %s1221_s28 = smov 128   ;;  %s1222_s29 = smov 8   ;;  %v585_v47 = vrot.slane %v584_v45, 4  ;;  %v594_v48 = vadd.f32 %v593_v46, %v592_v44 }
 0x180   : > { %929 = dma.vmem_to_hbm [thread:$0]  (%p1343_p12), %s1440_s23, 256, %s1445_s11, %s603_s6, %s1221_s28, %s1221_s28, %s1222_s29  }
 0x181   : > { %v586_v49 = vadd.f32 %v585_v47, %v584_v45  ;;  %v595_v50 = vrot.slane %v594_v48, 4  ;;  %s607_s26 = sand.u32 1, %s1271_s19   ;;  %s824_s9 = sshll.u32 %s1271_s19, 4 }
 0x182   : > { %s240_s25 = scalar_lea.vmem [#allocation9], %s1391_s14  ;;  %s246_s13 = scalar_lea.vmem [#allocation11], %s1391_s14 }
 0x183   : > { %v587_v51 = vrot.slane %v586_v49, 2  ;;  %v596_v52 = vadd.f32 %v595_v50, %v594_v48  ;;  %s640_s12 = sshll.u32 %s240_s25, 4  ;;  %s653_s24 = sshll.u32 %s246_s13, 4  ;;  %s1482_s12 = int_to_ptr.vmem [resolvable:$true] %s640_s12  ;;  %s1489_s24 = int_to_ptr.vmem [resolvable:$true] %s653_s24 }
 0x184   : > { %s1480_s6 = scalar_lea.hbm %s1562_s3, %s824_s9  ;;  %s1487_s8 = scalar_lea.hbm %s1563_s4, %s824_s9 }
 0x185   : > { %v588_v53 = vadd.f32 %v587_v51, %v586_v49  ;;  %v597_v54 = vrot.slane %v596_v52, 2  ;;  %s1491_s21 = scalar_lea.sflag [#allocation10], %s607_s26  ;;  %s1108_s10 = scalar_lea.vmem %s1482_s12, 16 }
 0x186   : > { %p1109_p10 = scmp.ne.s32.totalorder %s1482_s12, %s1108_s10  ;;  %s1223_s28 = smov [#allocation9]  }
 0x187   : > { %v589_v55 = vrot.slane %v588_v53, 1  ;;  %v598_v56 = vadd.f32 %v597_v54, %v596_v52  ;;  %s1112_s29 = sshll.u32 %s1223_s28, 4  ;;  %s1113_s29 = int_to_ptr.vmem [resolvable:$false] %s1112_s29 }
 0x188   : > { %p1110_p13 = pnand %p1109_p10, %p1343_p12  ;;  %s1114_s23 = scalar_lea.vmem %s1113_s29, 32 }
 0x189   : > { %v599_v57 = vrot.slane %v598_v56, 1  ;;  %v590_v58 = vadd.f32 %v589_v55, %v588_v53  ;;  %p1115_p7 = scmp.lt.s32.totalorder %s1482_s12, %s1113_s29  ;;  %p1116_p9 = scmp.lt.s32.totalorder %s1114_s23, %s1108_s10 }
 0x18a   : > { %p1111_p3 = pneg %p1110_p13 }
 0x18b   : > { %591 = vst [vmem:[%s240_s25] sm:$0x1] %v590_v58  ;;  %v600_v59 = vadd.f32 %v599_v57, %v598_v56  ;;  %p1117_p2 = por %p1116_p9, %p1115_p7 }
 0x18d   : > { %p1118_p0 = pnand %p1117_p2, %p1111_p3 }
 0x18f   : > { %1121 = shalt.err (!%p1118_p0)
}
 0x190   : > { %s1122_s26 = scalar_lea.hbm %s1480_s6, 16  ;;  %s1126_s11 = scalar_lea.hbm %s1562_s3, 32 }
 0x191   : > { %p1123_p5 = scmp.ne.s32.totalorder %s1480_s6, %s1122_s26  ;;  %p1127_p4 = scmp.lt.u32.totalorder %s1480_s6, %s1562_s3 }
 0x192   : > { %p1128_p6 = scmp.lt.u32.totalorder %s1126_s11, %s1122_s26  ;;  %p1130_p10 = scmp.lt.u32.totalorder %s1122_s26, %s1480_s6 }
 0x193   : > { %p1124_p11 = pnand %p1123_p5, %p1343_p12 }
 0x194   : > { %p1129_p8 = por %p1128_p6, %p1127_p4 }
 0x195   : > { %p1125_p1 = pneg %p1124_p11 }
 0x196   : > { %p1131_p13 = por %p1130_p10, %p1129_p8 }
 0x198   : > { %p1132_p3 = pnand %p1131_p13, %p1125_p1 }
 0x19a   : > { %1135 = shalt.err (!%p1132_p3)
}
 0x19b   : > { %930 = dma.vmem_to_hbm [thread:$0]  (%p1343_p12), %s1482_s12, 16, %s1480_s6, %s1491_s21   ;;  %601 = vst [vmem:[%s246_s13] sm:$0x1] %v600_v59 }
 0x19c   : > { %s1136_s10 = scalar_lea.vmem %s1489_s24, 16  ;;  %s1224_s28 = smov [#allocation11]  }
 0x19d   : > { %p1137_p7 = scmp.ne.s32.totalorder %s1489_s24, %s1136_s10  ;;  %s1140_s29 = sshll.u32 %s1224_s28, 4  ;;  %s1141_s29 = int_to_ptr.vmem [resolvable:$false] %s1140_s29 }
 0x19e   : > { %s1142_s23 = scalar_lea.vmem %s1141_s29, 32  ;;  %p1143_p0 = scmp.lt.s32.totalorder %s1489_s24, %s1141_s29 }
 0x19f   : > { %p1138_p9 = pnand %p1137_p7, %p1343_p12  ;;  %p1144_p5 = scmp.lt.s32.totalorder %s1142_s23, %s1136_s10 }
 0x1a1   : > { %p1139_p2 = pneg %p1138_p9  ;;  %p1145_p11 = por %p1144_p5, %p1143_p0 }
 0x1a3   : > { %p1146_p1 = pnand %p1145_p11, %p1139_p2 }
 0x1a5   : > { %1149 = shalt.err (!%p1146_p1)
}
 0x1a6   : > { %s1150_s14 = scalar_lea.hbm %s1487_s8, 16  ;;  %s1154_s6 = scalar_lea.hbm %s1563_s4, 32 }
 0x1a7   : > { %p1151_p4 = scmp.ne.s32.totalorder %s1487_s8, %s1150_s14  ;;  %p1155_p10 = scmp.lt.u32.totalorder %s1487_s8, %s1563_s4 }
 0x1a8   : > { %p1156_p13 = scmp.lt.u32.totalorder %s1154_s6, %s1150_s14  ;;  %p1158_p7 = scmp.lt.u32.totalorder %s1150_s14, %s1487_s8 }
 0x1a9   : > { %p1152_p6 = pnand %p1151_p4, %p1343_p12 }
 0x1aa   : > { %p1157_p3 = por %p1156_p13, %p1155_p10 }
 0x1ab   : > { %p1153_p8 = pneg %p1152_p6 }
 0x1ac   : > { %p1159_p9 = por %p1158_p7, %p1157_p3 }
 0x1ae   : > { %p1160_p2 = pnand %p1159_p9, %p1153_p8 }
 0x1b0   : > { %1163 = shalt.err (!%p1160_p2)
}
 0x1b1   : > { %931 = dma.vmem_to_hbm [thread:$0]  (%p1343_p12), %s1489_s24, 16, %s1487_s8, %s1491_s21  }
 0x1b2 PF: > { %s665_s25 = sand.u32 1, %s1198_s15   ;;  %p1578_p0 = scmp.ne.s32.totalorder %s1568_s22, 0 }
 0x1b3   : > { %p1579_p5 = scmp.ge.s32.totalorder %s1210_s18, 2  ;;  %s666_s11 = scalar_lea.sflag [#allocation5], %s665_s25 }
 0x1b5   : > { %p944_p11 = pnand %p1579_p5, %p1578_p0 }
 0x1b7   : > { %1189 = dma.done.wait (!%p944_p11), %s666_s11, 256  }
 0x1b8   : > { %1191 = vsyncadd (!%p944_p11), %s666_s11, 4294967040  ;;  %s674_s19 = sand.u32 1, %s786_s20  }
 0x1b9   : > { %s675_s7 = scalar_lea.sflag [#allocation10], %s674_s19 }
 0x1ba   : > { %1193 = dma.done.wait (!%p944_p11), %s675_s7, 32  }
 0x1bb   : > { %1195 = vsyncadd (!%p944_p11), %s675_s7, 4294967264  ;;  %p22_p12 = scmp.ge.s32.totalorder %s1308_s27, 4   ;;  %s1580_s15 = smov %s1202_s16 }
 0x1bc   : > { %s1581_s16 = smov %s1206_s17  ;;  %s1582_s17 = smov %s1339_s30 }
 0x1bd   : > { %s1583_s18 = smov %s1308_s27  ;;  %24 = sbr.rel (!%p22_p12) target bundleno = 8 (0x8), region = 111 }
 0x1c4   :  { %687 = vsyncpa [#allocation4], 1 }
 0x1c5   :  { %689 = vsyncpa [#allocation4 + $0x1], 1 }
 0x1c6   :  { %690 = vsyncpa [#allocation7], 1 }
 0x1c7   :  { %691 = vsyncpa [#allocation5], 1 }
 0x1c8   :  { %693 = vsyncpa [#allocation5 + $0x1], 1 }
 0x1c9   :  { %694 = vsyncpa [#allocation10], 1 }
 0x1ca   :  { %696 = vsyncpa [#allocation10 + $0x1], 1 }

</bundles_post_ra>
